<compile_context>
chip_gen: v7x
topology: tpu7x:2x2x1
jax: 0.10.0
libtpu: 0.0.40
codegen_flags: <defaults>
</compile_context>

<pallas_src>
import functools

import jax
import jax.numpy as jnp
from jax.experimental import pallas as pl
from jax.experimental.pallas import tpu as pltpu

_LANES = 128
_SP_INTERNAL_THRESHOLD = 20.0  # fixed internal threshold of F.softplus
_VMEM_LIMIT_BYTES = 32 * 1024 * 1024


def _round_up(a, m):
    return ((a + m - 1) // m) * m


def _device_kind():
    try:
        return jax.devices()[0].device_kind.lower()
    except Exception:
        return ""


def _pick_target_block_bytes(itemsize):
    """Per-generation target bytes per block per direction."""
    kind = _device_kind()
    if "v7" in kind:
        # 3.2 TB/s HBM: bigger blocks amortize the fixed per-step overhead.
        # 2 bufs * (in + out) * 4 MiB = 16 MiB, inside the 32 MiB scoped limit
        # and well under v7x's 64 MiB physical VMEM per TensorCore.
        return 4 * 1024 * 1024
    if itemsize < 4 and ("v5e" in kind or "v5 lite" in kind or "v5lite" in kind):
        # bf16/int8 storage is upcast to f32 in-kernel; keep headroom on v5e.
        return 1 * 1024 * 1024
    return 2 * 1024 * 1024


def _bounded_softplus_kernel(x_ref, o_ref, *, beta, threshold, eps):
    # Compute in f32 regardless of storage dtype (eps=1e-6 and the
    # transcendentals must behave like torch's f32 softplus for bf16 I/O).
    x = x_ref[...].astype(jnp.float32)
    bx = x if beta == 1.0 else x * beta
    # Clamp the exp argument so the unused where() branch never overflows
    # (also protects against garbage in masked tail-block padding).
    sp = jnp.log1p(jnp.exp(jnp.minimum(bx, _SP_INTERNAL_THRESHOLD)))
    if beta != 1.0:
        sp = sp * (1.0 / beta)
    sp = jnp.where(bx > _SP_INTERNAL_THRESHOLD, x, sp)
    clamped = jnp.minimum(sp, threshold)  # torch.clamp(max=threshold)
    o_ref[...] = (clamped + eps).astype(o_ref.dtype)


def _pick_tile_rows(rows, sublane, itemsize, target_bytes):
    target_rows = max(
        sublane, (target_bytes // (_LANES * itemsize)) // sublane * sublane
    )
    # Keep >= 2 grid steps when there is enough data (DMA/compute pipelining
    # and both v7x TensorCores on the "parallel" axis), but never shrink the
    # block below the per-generation target just to manufacture extra steps
    # on single-TC v5e / v6e.
    half_rows = _round_up(pl.cdiv(rows, 2), sublane)
    return int(max(sublane, min(target_rows, half_rows)))


def bounded_softplus(x, beta=1.0, threshold=6.0, eps=1e-6):
    """Applies BoundedSoftplus elementwise to an arbitrary-shaped array."""
    orig_shape = x.shape
    orig_dtype = x.dtype
    total = int(x.size)
    if total == 0:
        return x

    itemsize = jnp.dtype(orig_dtype).itemsize
    # Native sublane multiple: 8 for 4-byte, 16 for 2-byte, 32 for 1-byte dtypes.
    sublane = max(8, 32 // max(itemsize, 1))
    target_bytes = _pick_target_block_bytes(itemsize)

    kernel = functools.partial(
        _bounded_softplus_kernel,
        beta=float(beta),
        threshold=float(threshold),
        eps=float(eps),
    )
    cost = pl.CostEstimate(
        flops=6 * total,
        transcendentals=2 * total,          # exp + log1p per element
        bytes_accessed=2 * total * itemsize,
    )
    cparams = pltpu.CompilerParams(
        dimension_semantics=("parallel",),
        vmem_limit_bytes=_VMEM_LIMIT_BYTES,
    )

    x_flat = jnp.ravel(x)  # free (bitcast) for a contiguous array

    if total % _LANES == 0:
        # Lane-dense (rows, 128) slab; no padding needed.
        rows = total // _LANES
        tile_rows = _pick_tile_rows(rows, sublane, itemsize, target_bytes)
        grid = (pl.cdiv(rows, tile_rows),)  # partial tail block masked by Pallas
        out = pl.pallas_call(
            kernel,
            out_shape=jax.ShapeDtypeStruct((rows, _LANES), orig_dtype),
            grid_spec=pltpu.PrefetchScalarGridSpec(
                num_scalar_prefetch=0,
                grid=grid,
                in_specs=[pl.BlockSpec((tile_rows, _LANES), lambda i: (i, 0))],
                out_specs=pl.BlockSpec((tile_rows, _LANES), lambda i: (i, 0)),
            ),
            compiler_params=cparams,
            cost_estimate=cost,
        )(x_flat.reshape(rows, _LANES))
        return out.reshape(orig_shape)

    # Non-128-aligned total: run directly on the flat 1-D array so there is no
    # full-tensor pad on the way in nor full-tensor slice on the way out.
    if total * itemsize <= target_bytes:
        # Single block exactly equal to the full (ragged) array extent.
        tile_elems = total
        grid = (1,)
    else:
        rows = pl.cdiv(total, _LANES)
        tile_elems = _pick_tile_rows(rows, sublane, itemsize, target_bytes) * _LANES
        grid = (pl.cdiv(total, tile_elems),)  # ragged tail block masked by Pallas
    out = pl.pallas_call(
        kernel,
        out_shape=jax.ShapeDtypeStruct((total,), orig_dtype),
        grid_spec=pltpu.PrefetchScalarGridSpec(
            num_scalar_prefetch=0,
            grid=grid,
            in_specs=[pl.BlockSpec((tile_elems,), lambda i: (i,))],
            out_specs=pl.BlockSpec((tile_elems,), lambda i: (i,)),
        ),
        compiler_params=cparams,
        cost_estimate=cost,
    )(x_flat)
    return out.reshape(orig_shape)


def _reference(x, beta=1.0, threshold=6.0, eps=1e-6):
    # Pure-JAX reference mirroring torch.nn.functional.softplus semantics (f32).
    xf = x.astype(jnp.float32)
    bx = xf * beta
    sp = jnp.where(bx > 20.0, xf, jnp.log1p(jnp.exp(jnp.minimum(bx, 20.0))) / beta)
    return (jnp.minimum(sp, threshold) + eps).astype(x.dtype)


if __name__ == "__main__":
    key = jax.random.PRNGKey(0)
    k0, k1, k2, k3 = jax.random.split(key, 4)

    # Primary check: small NCHW input (batch=2, channels=4, spatial=16x16).
    x = jax.random.normal(k0, (2, 4, 16, 16), dtype=jnp.float32) * 5.0
    out = jax.block_until_ready(bounded_softplus(x, beta=1.0, threshold=6.0, eps=1e-6))
    assert out.shape == x.shape
    assert out.dtype == x.dtype
    assert float(jnp.max(jnp.abs(out - _reference(x)))) < 1e-5

    # Non-128-aligned total (1155 elems): zero-copy 1-D path, full-array block.
    x_odd = jax.random.normal(k1, (3, 5, 7, 11), dtype=jnp.float32) * 5.0
    out_odd = jax.block_until_ready(bounded_softplus(x_odd))
    assert out_odd.shape == x_odd.shape
    assert float(jnp.max(jnp.abs(out_odd - _reference(x_odd)))) < 1e-5

    # 128-aligned total but rows not a multiple of tile_rows: masked 2-D tail.
    x_tail = jax.random.normal(k2, (2, 5, 16, 32), dtype=jnp.float32) * 5.0
    out_tail = jax.block_until_ready(bounded_softplus(x_tail))
    assert float(jnp.max(jnp.abs(out_tail - _reference(x_tail)))) < 1e-5

    # Non-default beta / threshold exercises the non-specialized kernel body.
    x_b = jax.random.normal(k3, (2, 4, 16, 16), dtype=jnp.float32) * 5.0
    out_b = jax.block_until_ready(bounded_softplus(x_b, beta=2.0, threshold=4.0, eps=1e-6))
    assert float(jnp.max(jnp.abs(out_b - _reference(x_b, beta=2.0, threshold=4.0)))) < 1e-5

    print("KERNEL_OK")
</pallas_src>

<mosaic_0001>
module attributes {stable_mosaic.version = 11 : i64} {
  func.func @_bounded_softplus_kernel(%arg0: i32, %arg1: memref<8x128xf32, #tpu.memory_space<vmem>>, %arg2: memref<8x128xf32, #tpu.memory_space<vmem>>) attributes {dimension_semantics = [#tpu.dimension_semantics<parallel>], iteration_bounds = array<i64: 2>, scalar_prefetch = 0 : i64, scratch_operands = 0 : i64, tpu.core_type = #tpu.core_type<tc>, window_params = [{transform_indices = @transform_0, window_bounds = array<i64: 8, 128>}, {transform_indices = @transform_1, window_bounds = array<i64: 8, 128>}]} {
    %c0 = arith.constant 0 : index
    %c0_0 = arith.constant 0 : index
    %0 = vector.load %arg1[%c0, %c0_0] : memref<8x128xf32, #tpu.memory_space<vmem>>, vector<8x128xf32>
    %cst = arith.constant 2.000000e+01 : f32
    %1 = vector.broadcast %cst : f32 to vector<8x128xf32>
    %2 = arith.minimumf %0, %1 : vector<8x128xf32>
    %3 = math.exp %2 : vector<8x128xf32>
    %4 = math.log1p %3 : vector<8x128xf32>
    %cst_1 = arith.constant 2.000000e+01 : f32
    %5 = vector.broadcast %cst_1 : f32 to vector<8x128xf32>
    %6 = arith.cmpf ogt, %0, %5 : vector<8x128xf32>
    %7 = arith.select %6, %0, %4 : vector<8x128xi1>, vector<8x128xf32>
    %cst_2 = arith.constant 6.000000e+00 : f32
    %8 = vector.broadcast %cst_2 : f32 to vector<8x128xf32>
    %9 = arith.minimumf %7, %8 : vector<8x128xf32>
    %cst_3 = arith.constant 9.99999997E-7 : f32
    %10 = vector.broadcast %cst_3 : f32 to vector<8x128xf32>
    %11 = arith.addf %9, %10 : vector<8x128xf32>
    %c0_4 = arith.constant 0 : index
    %c0_5 = arith.constant 0 : index
    %12 = vector.load %arg2[%c0_4, %c0_5] : memref<8x128xf32, #tpu.memory_space<vmem>>, vector<8x128xf32>
    tpu.vector_store %arg2[%c0_4, %c0_5], %11 {strides = array<i32>} : memref<8x128xf32, #tpu.memory_space<vmem>>, vector<8x128xf32>,
    return
  }
  func.func @transform_0(%arg0: i32) -> (i32, i32) {
    %c0_i32 = arith.constant 0 : i32
    %c0_i32_0 = arith.constant 0 : i32
    return %arg0, %c0_i32 : i32, i32
  }
  func.func @transform_1(%arg0: i32) -> (i32, i32) {
    %c0_i32 = arith.constant 0 : i32
    %c0_i32_0 = arith.constant 0 : i32
    return %arg0, %c0_i32 : i32, i32
  }
}

</mosaic_0001>

<bundles_post_ra>
// kernel: tpu_custom_call.1
= control target key start
LH: loop header
LB: loop body
LE: loop exit
PB: predicated region body
PF: predicated region fallthrough
CT: control target
= control target key end

     0   :  { %6 = vsyncpa [#allocation3], 0  ;;  %s567_s0 = inlined_call_operand.hbm [shape: f32[16,128], index: 0, kind: input, shape index: {}]   ;;  %s568_s1 = inlined_call_operand.hbm [shape: f32[16,128], index: 1, kind: output, shape index: {}]  }
   0x1   :  { %8 = vsyncpa [#allocation3 + $0x1], 0 }
   0x2   :  { %9 = vsyncpa [#allocation4], 0 }
   0x3   :  { %11 = vsyncpa [#allocation4 + $0x1], 0  ;;  %s406_s6 = smov 0   ;;  %s408_s7 = smov 0  }
   0x4   :  { %s410_s8 = smov 0   ;;  %s412_s9 = smov 0  }
   0x5 LB: > { %s427_s10 = sadd.s32 4294967295, %s392_s9   ;;  %s234_s11 = sadd.s32 4294967294, %s392_s9   ;;  %s392_s9 = sphi %s412_s9, %s583_s9   ;;  %s388_s8 = sphi %s410_s8, %s582_s8   ;;  %s384_s7 = sphi %s408_s7, %s581_s7   ;;  %s380_s6 = sphi %s406_s6, %s580_s6  }
   0x6   : > { %s431_s12 = sadd.s32 1, %s392_s9   ;;  %s24_s13 = sadd.s32 1, %s388_s8 }
   0x7   : > { %s21_s14 = ssub.s32 %s392_s9, %s431_s12  ;;  %p31_p0 = scmp.ne.s32.totalorder %s388_s8, %s384_s7 }
   0x8   : > { %p22_p1 = scmp.eq.s32.totalorder %s21_s14, 0  ;;  %p32_p2 = scmp.eq.s32.totalorder %s392_s9, 0 }
   0x9   : > { %p37_p3 = scmp.ne.s32.totalorder %s384_s7, %s380_s6  ;;  %p38_p4 = scmp.eq.s32.totalorder %s427_s10, 0 }
   0xa   : > { %s443_s15 = scalar_select %p22_p1, %s388_s8, %s24_s13  }
   0xb   : > { %p445_p5 = por %p32_p2, %p31_p0  ;;  %p449_p6 = por %p38_p4, %p37_p3 }
   0xc   : > { %p61_p7 = scmp.eq.s32.totalorder %s427_s10, 1  ;;  %p67_p8 = scmp.eq.s32.totalorder %s234_s11, 1 }
   0xd   : > { %p258_p10 = scmp.lt.s32.totalorder %s392_s9, 2  ;;  %s87_s20 = sand.u32 1, %s388_s8  }
   0xe   : > { %p456_p11 = por %p61_p7, %p31_p0  ;;  %p460_p12 = por %p67_p8, %p37_p3 }
   0xf   : > { %s238_s21 = sshll.u32 %s392_s9, 7  ;;  %s237_s22 = sshll.u32 %s87_s20, 3 }
  0x10   : > { %s572_s18 = scalar_select %p456_p11, 1, 0 }
  0x11   : > { %s573_s19 = scalar_select %p460_p12, 1, 0 }
  0x12   : > { %s469_s25 = scalar_lea.hbm %s567_s0, %s238_s21  ;;  %s91_s26 = scalar_lea.vmem [#allocation2], %s237_s22 }
  0x13   : > { %s98_s27 = sshll.u32 %s91_s26, 4  ;;  %p473_p13 = pnand %p258_p10, %p445_p5  ;;  %s477_s27 = int_to_ptr.vmem [resolvable:$true] %s98_s27 }
  0x14   : > { %s88_s29 = scalar_lea.sflag [#allocation3], %s87_s20  ;;  %s296_s30 = scalar_lea.hbm %s469_s25, 128 }
  0x15   : > { %p297_p2 = scmp.ne.s32.totalorder %s469_s25, %s296_s30  ;;  %p298_p3 = pneg %p473_p13 }
  0x16   : > { %s301_s4 = scalar_lea.hbm %s567_s0, 256  ;;  %p302_p5 = scmp.lt.u32.totalorder %s469_s25, %s567_s0 }
  0x17   : > { %p299_p4 = pnand %p298_p3, %p297_p2  ;;  %p303_p8 = scmp.lt.u32.totalorder %s301_s4, %s296_s30 }
  0x18   : > { %p305_p9 = scmp.lt.u32.totalorder %s296_s30, %s469_s25 }
  0x19   : > { %p300_p7 = pneg %p299_p4  ;;  %p304_p10 = por %p303_p8, %p302_p5 }
  0x1b   : > { %p306_p0 = por %p305_p9, %p304_p10 }
  0x1d   : > { %p307_p1 = pnand %p306_p0, %p300_p7 }
  0x1f   : > { %310 = shalt.err (!%p307_p1)
}
  0x20   : > { %s311_s13 = scalar_lea.vmem %s477_s27, 128  ;;  %s394_s14 = smov [#allocation2]  }
  0x21   : > { %p312_p2 = scmp.ne.s32.totalorder %s477_s27, %s311_s13  ;;  %s316_s16 = sshll.u32 %s394_s14, 4  ;;  %s317_s16 = int_to_ptr.vmem [resolvable:$false] %s316_s16 }
  0x22   : > { %s318_s20 = scalar_lea.vmem %s317_s16, 256  ;;  %p319_p11 = scmp.lt.s32.totalorder %s477_s27, %s317_s16 }
  0x23   : > { %p314_p4 = pnand %p312_p2, %p298_p3  ;;  %p320_p5 = scmp.lt.s32.totalorder %s318_s20, %s311_s13 }
  0x25   : > { %p315_p12 = pneg %p314_p4  ;;  %p321_p8 = por %p320_p5, %p319_p11 }
  0x27   : > { %p322_p9 = pnand %p321_p8, %p315_p12 }
  0x29   : > { %325 = shalt.err (!%p322_p9)
}
  0x2a   : > { %253 = dma.hbm_to_vmem [thread:$0]  (!%p473_p13), %s469_s25, 128, %s477_s27, %s88_s29  }
  0x2b   : > { %p575_p0 = scmp.lt.s32.totalorder %s392_s9, 3  ;;  %p576_p1 = scmp.ge.s32.totalorder %s392_s9, 1 }
  0x2d   : > { %p104_p3 = pnand %p576_p1, %p575_p0 }
  0x2e   : > { %s511_s21 = sand.u32 (!%p104_p3), 1, %s384_s7  }
  0x2f   : > { %107 = sbr.rel (%p104_p3) target bundleno = 106 (0x6a), region = 24  ;;  %s240_s22 = sshll.u32 (!%p104_p3), %s511_s21, 3 }
  0x30   : > { %s110_s23 = scalar_lea.sflag (!%p104_p3), [#allocation3], %s511_s21  ;;  %s113_s24 = scalar_lea.vmem (!%p104_p3), [#allocation2], %s240_s22 }
  0x36   : > { %371 = dma.done.wait (%p449_p6), %s110_s23, 128  }
  0x37   : > { %373 = vsyncadd (%p449_p6), %s110_s23, 4294967168  ;;  %v132_v0 = vld [vmem:[%s113_s24] sm:$0xff]  ;;  %s131_s17 = scalar_lea.vmem [#allocation5], %s240_s22  ;;  %s243_s26 = sshll.u32 %s427_s10, 7 }
  0x38   : > { %v133_v1 = vmin.f32 %v132_v0, 20.0  ;;  %vm145_vm1 = vcmp.gt.f32.partialorder %v132_v0, 20.0  ;;  %s164_s25 = sshll.u32 %s131_s17, 4  ;;  %s525_s29 = scalar_lea.hbm %s568_s1, %s243_s26  ;;  %s520_s25 = int_to_ptr.vmem [resolvable:$true] %s164_s25 }
  0x39   : > { %s151_s30 = scalar_lea.sflag [#allocation4], %s511_s21  ;;  %s326_s2 = scalar_lea.vmem %s520_s25, 128 }
  0x3a   : > { %v134_v2 = vmul.f32 1.442695, %v133_v1  ;;  %p327_p6 = scmp.ne.s32.totalorder %s520_s25, %s326_s2  ;;  %p577_p11 = scmp.ne.s32.totalorder %s572_s18, 0 }
  0x3b   : > { %s395_s10 = smov [#allocation5]  }
  0x3c   : > { %292 = vpow2.f32 %v134_v2  ;;  %p328_p12 = pnand %p327_p6, %p577_p11  ;;  %s330_s3 = sshll.u32 %s395_s10, 4  ;;  %s331_s3 = int_to_ptr.vmem [resolvable:$false] %s330_s3 }
  0x3d   : > { %s332_s4 = scalar_lea.vmem %s331_s3, 256  ;;  %p333_p7 = scmp.lt.s32.totalorder %s520_s25, %s331_s3 }
  0x3e   : > { %p329_p13 = pneg %p328_p12  ;;  %p334_p10 = scmp.lt.s32.totalorder %s332_s4, %s326_s2 }
  0x40   : > { %p335_p2 = por %p334_p10, %p333_p7 }
  0x42   : > { %p336_p4 = pnand %p335_p2, %p329_p13 }
  0x46   : > { %v293_v3 = vpop.eup %292 }
  0x47   : > { %v136_v4 = vadd.f32 1.0, %v293_v3  ;;  %v139_v5 = vmul.f32 -0.5, %v293_v3  ;;  %v142_v7 = vand.u32 2147483647, %v293_v3 }
  0x49   : > { %294 = vlog2.f32 %v136_v4  ;;  %v140_v6 = vadd.f32 1.0, %v139_v5  ;;  %vm143_vm0 = vcmp.lt.f32.partialorder %v142_v7, 0.0004427343 }
  0x4b   : > { %v141_v8 = vmul.f32 %v293_v3, %v140_v6 }
  0x53   : > { %v295_v9 = vpop.eup %294 }
  0x54   : > { %v138_v10 = vmul.f32 0.6931472, %v295_v9 }
  0x56   : > { %v144_v11 = vsel %vm143_vm0, %v141_v8, %v138_v10 }
  0x57   : > { %v146_v12 = vsel %vm145_vm1, %v132_v0, %v144_v11 }
  0x58   : > { %v147_v13 = vmin.f32 %v146_v12, 6.0 }
  0x5a   : > { %v148_v14 = vadd.f32 1e-06, %v147_v13 }
  0x5c   : > { %149 = vst [vmem:[%s131_s17] sm:$0xff] %v148_v14 }
  0x5d   : > { %339 = shalt.err (!%p336_p4)
}
  0x5e   : > { %s340_s5 = scalar_lea.hbm %s525_s29, 128  ;;  %s344_s14 = scalar_lea.hbm %s568_s1, 256 }
  0x5f   : > { %p341_p5 = scmp.ne.s32.totalorder %s525_s29, %s340_s5  ;;  %p345_p0 = scmp.lt.u32.totalorder %s525_s29, %s568_s1 }
  0x60   : > { %p346_p1 = scmp.lt.u32.totalorder %s344_s14, %s340_s5  ;;  %p348_p6 = scmp.lt.u32.totalorder %s340_s5, %s525_s29 }
  0x61   : > { %p342_p8 = pnand %p341_p5, %p577_p11 }
  0x62   : > { %p347_p3 = por %p346_p1, %p345_p0 }
  0x63   : > { %p343_p9 = pneg %p342_p8 }
  0x64   : > { %p349_p12 = por %p348_p6, %p347_p3 }
  0x66   : > { %p350_p13 = pnand %p349_p12, %p343_p9 }
  0x68   : > { %353 = shalt.err (!%p350_p13)
}
  0x69   : > { %248 = dma.vmem_to_hbm [thread:$0]  (%p577_p11), %s520_s25, 128, %s525_s29, %s151_s30  }
  0x6a PF: > { %s176_s21 = sand.u32 1, %s380_s6   ;;  %p578_p7 = scmp.ne.s32.totalorder %s573_s19, 0 }
  0x6b   : > { %p579_p10 = scmp.ge.s32.totalorder %s392_s9, 2  ;;  %s177_s22 = scalar_lea.sflag [#allocation4], %s176_s21 }
  0x6d   : > { %p255_p2 = pnand %p579_p10, %p578_p7 }
  0x6f   : > { %375 = dma.done.wait (!%p255_p2), %s177_s22, 128  }
  0x70   : > { %377 = vsyncadd (!%p255_p2), %s177_s22, 4294967168  ;;  %p14_p4 = scmp.ge.s32.totalorder %s431_s12, 4   ;;  %s580_s6 = smov %s384_s7 }
  0x71   : > { %s581_s7 = smov %s388_s8  ;;  %s582_s8 = smov %s443_s15 }
  0x72   : > { %s583_s9 = smov %s431_s12  ;;  %16 = sbr.rel (!%p14_p4) target bundleno = 5 (0x5), region = 69 }
  0x79   :  { %182 = vsyncpa [#allocation3], 1 }
  0x7a   :  { %184 = vsyncpa [#allocation3 + $0x1], 1 }
  0x7b   :  { %185 = vsyncpa [#allocation4], 1 }
  0x7c   :  { %187 = vsyncpa [#allocation4 + $0x1], 1 }

</bundles_post_ra>
